<compile_context>
chip_gen: v5e
topology: v5e:2x2
jax: 0.10.0
libtpu: 0.0.40
codegen_flags: <defaults>
</compile_context>

<pallas_src>
import jax
import jax.numpy as jnp
from jax.experimental import pallas as pl
from jax.experimental.pallas import tpu as pltpu


def _round_up(x, m):
    return (x + m - 1) // m * m


def _choose_tb(B, D, vmem_budget_bytes=16 * 1024 * 1024):
    """Pick a batch tile: as big as fits a conservative VMEM budget, capped at 1024 rows."""
    # double-buffered x tile + output slab, plus f32 h1/h2/out temporaries per row
    bytes_per_row = 2 * 4 * (D + 128) + 4 * (128 + 64 + 128)
    tb = vmem_budget_bytes // max(bytes_per_row, 1)
    tb = max(8, min(1024, (tb // 16) * 16))
    return min(tb, _round_up(B, 8))


def _discriminator_kernel(x_ref, w1_ref, b1_ref, w2_ref, b2_ref, w3_ref, b3_ref, out_ref):
    # Layer 1: Linear(D, 128) + LeakyReLU(0.2). MXU accumulates in f32; bias/activation in f32.
    h1 = jnp.dot(x_ref[...], w1_ref[...], preferred_element_type=jnp.float32) + b1_ref[...]
    h1 = jnp.where(h1 > 0, h1, 0.2 * h1)

    # Layer 2: Linear(128, 64) + LeakyReLU(0.2).
    h2 = jnp.dot(h1.astype(w2_ref.dtype), w2_ref[...],
                 preferred_element_type=jnp.float32) + b2_ref[...]
    h2 = jnp.where(h2 > 0, h2, 0.2 * h2)

    # Output head: Linear(64, 1) as a lane-reduce (N=1 matmul wastes the MXU), then sigmoid.
    logit = jnp.sum(h2 * w3_ref[...], axis=-1, keepdims=True) + b3_ref[0, 0]
    validity = jax.nn.sigmoid(logit)

    # Lane-dense (TB, 128) output slab: cols 0..63 = features, cols 64..127 = validity broadcast.
    out = jnp.concatenate([h2, jnp.broadcast_to(validity, h2.shape)], axis=-1)
    out_ref[...] = out.astype(out_ref.dtype)


def discriminator_forward(x, params, *, compute_dtype=jnp.float32):
    """x: (B, D). params: w1(D,128), b1(1,128), w2(128,64), b2(1,64), w3(1,64), b3(1,1).

    Returns (validity (B,1), features (B,64)), both float32.
    """
    B, D = x.shape
    w1 = params["w1"].astype(compute_dtype)
    w2 = params["w2"].astype(compute_dtype)
    b1 = params["b1"].astype(jnp.float32)
    b2 = params["b2"].astype(jnp.float32)
    w3 = params["w3"].astype(jnp.float32)   # (1, 64) row for the VPU lane-reduce
    b3 = params["b3"].astype(jnp.float32)   # (1, 1) scalar -> SMEM

    TB = _choose_tb(B, D)
    B_pad = _round_up(B, TB)
    x_p = x.astype(compute_dtype)
    if B_pad != B:
        x_p = jnp.pad(x_p, ((0, B_pad - B), (0, 0)))

    itemsize = jnp.dtype(compute_dtype).itemsize
    cost = pl.CostEstimate(
        flops=2 * B_pad * (D * 128 + 128 * 64 + 64),
        transcendentals=B_pad,
        bytes_accessed=(B_pad * D * itemsize                      # x stream in
                        + (D * 128 + 128 * 64) * itemsize         # weights
                        + (128 + 64 + 64 + 1) * 4                 # biases + w3 row
                        + B_pad * 128 * 4),                       # output slab
    )

    out_slab = pl.pallas_call(
        _discriminator_kernel,
        out_shape=jax.ShapeDtypeStruct((B_pad, 128), jnp.float32),
        grid=(B_pad // TB,),
        in_specs=[
            pl.BlockSpec((TB, D), lambda i: (i, 0)),           # x: streamed per batch tile
            pl.BlockSpec(w1.shape, lambda i: (0, 0)),          # weights stay VMEM-resident
            pl.BlockSpec(b1.shape, lambda i: (0, 0)),
            pl.BlockSpec(w2.shape, lambda i: (0, 0)),
            pl.BlockSpec(b2.shape, lambda i: (0, 0)),
            pl.BlockSpec(w3.shape, lambda i: (0, 0)),
            pl.BlockSpec(memory_space=pltpu.MemorySpace.SMEM),  # b3 scalar in SMEM
        ],
        out_specs=pl.BlockSpec((TB, 128), lambda i: (i, 0)),
        compiler_params=pltpu.CompilerParams(
            dimension_semantics=("parallel",),
        ),
        cost_estimate=cost,
    )(x_p, w1, b1, w2, b2, w3, b3)

    features = out_slab[:B, :64]
    validity = out_slab[:B, 64:65]
    return validity, features


def init_params(key, input_dim):
    """Deterministic synthetic parameters matching the PyTorch module's shapes."""
    k1, k2, k3, k4, k5, k6 = jax.random.split(key, 6)

    def uni(k, shape, fan_in):
        bound = 1.0 / jnp.sqrt(fan_in)
        return jax.random.uniform(k, shape, jnp.float32, -bound, bound)

    return {
        # Linear weights stored as (in, out) — transpose of torch's (out, in).
        "w1": uni(k1, (input_dim, 128), input_dim),
        "b1": uni(k2, (1, 128), input_dim),
        "w2": uni(k3, (128, 64), 128),
        "b2": uni(k4, (1, 64), 128),
        "w3": uni(k5, (1, 64), 64),     # output head weight as a row
        "b3": uni(k6, (1, 1), 64),
    }


def _reference_forward(x, params):
    h1 = x @ params["w1"] + params["b1"]
    h1 = jnp.where(h1 > 0, h1, 0.2 * h1)
    h2 = h1 @ params["w2"] + params["b2"]
    h2 = jnp.where(h2 > 0, h2, 0.2 * h2)
    logit = jnp.sum(h2 * params["w3"], axis=-1, keepdims=True) + params["b3"]
    return jax.nn.sigmoid(logit), h2


if __name__ == "__main__":
    key = jax.random.PRNGKey(0)
    kx, kp = jax.random.split(key)

    batch, input_dim = 8, 32
    x = jax.random.normal(kx, (batch, input_dim), jnp.float32)
    params = init_params(kp, input_dim)

    # f32 path (exact check)
    validity, features = discriminator_forward(x, params)
    validity = jax.block_until_ready(validity)
    features = jax.block_until_ready(features)

    ref_v, ref_f = _reference_forward(x, params)
    assert validity.shape == (batch, 1)
    assert features.shape == (batch, 64)
    assert jnp.allclose(validity, ref_v, atol=1e-5, rtol=1e-5)
    assert jnp.allclose(features, ref_f, atol=1e-5, rtol=1e-5)

    # bf16 streaming path (halves HBM traffic on v6e/v7x); f32 accumulation, looser tolerance.
    v_bf, f_bf = discriminator_forward(x, params, compute_dtype=jnp.bfloat16)
    v_bf = jax.block_until_ready(v_bf)
    f_bf = jax.block_until_ready(f_bf)
    assert jnp.allclose(v_bf, ref_v, atol=5e-2, rtol=5e-2)
    assert jnp.allclose(f_bf, ref_f, atol=5e-2, rtol=5e-2)

    print("KERNEL_OK")
</pallas_src>

<mosaic_0001>
module attributes {stable_mosaic.version = 11 : i64} {
  func.func @_discriminator_kernel(%arg0: i32, %arg1: memref<8x32xf32, #tpu.memory_space<vmem>>, %arg2: memref<32x128xf32, #tpu.memory_space<vmem>>, %arg3: memref<1x128xf32, #tpu.memory_space<vmem>>, %arg4: memref<128x64xf32, #tpu.memory_space<vmem>>, %arg5: memref<1x64xf32, #tpu.memory_space<vmem>>, %arg6: memref<1x64xf32, #tpu.memory_space<vmem>>, %arg7: memref<1x1xf32, #tpu.memory_space<smem>>, %arg8: memref<8x128xf32, #tpu.memory_space<vmem>>) attributes {dimension_semantics = [#tpu.dimension_semantics<parallel>], iteration_bounds = array<i64: 1>, scalar_prefetch = 0 : i64, scratch_operands = 0 : i64, tpu.core_type = #tpu.core_type<tc>, window_params = [{transform_indices = @transform_0, window_bounds = array<i64: 8, 32>}, {pipeline_mode = #tpu.pipeline_mode<synchronous>, transform_indices = @transform_1, window_bounds = array<i64: 32, 128>}, {pipeline_mode = #tpu.pipeline_mode<synchronous>, transform_indices = @transform_2, window_bounds = array<i64: 1, 128>}, {pipeline_mode = #tpu.pipeline_mode<synchronous>, transform_indices = @transform_3, window_bounds = array<i64: 128, 64>}, {pipeline_mode = #tpu.pipeline_mode<synchronous>, transform_indices = @transform_4, window_bounds = array<i64: 1, 64>}, {pipeline_mode = #tpu.pipeline_mode<synchronous>, transform_indices = @transform_5, window_bounds = array<i64: 1, 64>}, {transform_indices = @transform_6, window_bounds = array<i64: 1, 1>}, {transform_indices = @transform_7, window_bounds = array<i64: 8, 128>}]} {
    %c0 = arith.constant 0 : index
    %c0_0 = arith.constant 0 : index
    %0 = vector.load %arg1[%c0, %c0_0] : memref<8x32xf32, #tpu.memory_space<vmem>>, vector<8x32xf32>
    %c0_1 = arith.constant 0 : index
    %c0_2 = arith.constant 0 : index
    %1 = vector.load %arg2[%c0_1, %c0_2] : memref<32x128xf32, #tpu.memory_space<vmem>>, vector<32x128xf32>
    %cst = arith.constant dense<0.000000e+00> : vector<8x128xf32>
    %2 = tpu.matmul %0, %1, %cst {dimension_numbers = #tpu.dot_dimension_numbers<[1], [0], [0], [1], [0, 0, 1, 1], [], []>} : vector<8x32xf32>, vector<32x128xf32>, vector<8x128xf32> -> vector<8x128xf32>
    %c0_3 = arith.constant 0 : index
    %c0_4 = arith.constant 0 : index
    %3 = vector.load %arg3[%c0_3, %c0_4] : memref<1x128xf32, #tpu.memory_space<vmem>>, vector<1x128xf32>
    %4 = vector.broadcast %3 : vector<1x128xf32> to vector<8x128xf32>
    %5 = arith.addf %2, %4 : vector<8x128xf32>
    %cst_5 = arith.constant 0.000000e+00 : f32
    %6 = vector.broadcast %cst_5 : f32 to vector<8x128xf32>
    %7 = arith.cmpf ogt, %5, %6 : vector<8x128xf32>
    %cst_6 = arith.constant 2.000000e-01 : f32
    %8 = vector.broadcast %cst_6 : f32 to vector<8x128xf32>
    %9 = arith.mulf %8, %5 : vector<8x128xf32>
    %10 = arith.select %7, %5, %9 : vector<8x128xi1>, vector<8x128xf32>
    %c0_7 = arith.constant 0 : index
    %c0_8 = arith.constant 0 : index
    %11 = vector.load %arg4[%c0_7, %c0_8] : memref<128x64xf32, #tpu.memory_space<vmem>>, vector<128x64xf32>
    %cst_9 = arith.constant dense<0.000000e+00> : vector<8x64xf32>
    %12 = tpu.matmul %10, %11, %cst_9 {dimension_numbers = #tpu.dot_dimension_numbers<[1], [0], [0], [1], [0, 0, 1, 1], [], []>} : vector<8x128xf32>, vector<128x64xf32>, vector<8x64xf32> -> vector<8x64xf32>
    %c0_10 = arith.constant 0 : index
    %c0_11 = arith.constant 0 : index
    %13 = vector.load %arg5[%c0_10, %c0_11] : memref<1x64xf32, #tpu.memory_space<vmem>>, vector<1x64xf32>
    %14 = vector.broadcast %13 : vector<1x64xf32> to vector<8x64xf32>
    %15 = arith.addf %12, %14 : vector<8x64xf32>
    %cst_12 = arith.constant 0.000000e+00 : f32
    %16 = vector.broadcast %cst_12 : f32 to vector<8x64xf32>
    %17 = arith.cmpf ogt, %15, %16 : vector<8x64xf32>
    %cst_13 = arith.constant 2.000000e-01 : f32
    %18 = vector.broadcast %cst_13 : f32 to vector<8x64xf32>
    %19 = arith.mulf %18, %15 : vector<8x64xf32>
    %20 = arith.select %17, %15, %19 : vector<8x64xi1>, vector<8x64xf32>
    %c0_14 = arith.constant 0 : index
    %c0_15 = arith.constant 0 : index
    %21 = vector.load %arg6[%c0_14, %c0_15] : memref<1x64xf32, #tpu.memory_space<vmem>>, vector<1x64xf32>
    %22 = vector.broadcast %21 : vector<1x64xf32> to vector<8x64xf32>
    %23 = arith.mulf %20, %22 : vector<8x64xf32>
    %cst_16 = arith.constant dense<0.000000e+00> : vector<8xf32>
    %24 = vector.multi_reduction <add>, %23, %cst_16 [1] : vector<8x64xf32> to vector<8xf32>
    %25 = vector.shape_cast %24 : vector<8xf32> to vector<8x1xf32>
    %c0_17 = arith.constant 0 : index
    %c0_18 = arith.constant 0 : index
    %26 = memref.load %arg7[%c0_17, %c0_18] : memref<1x1xf32, #tpu.memory_space<smem>>
    %27 = vector.broadcast %26 : f32 to vector<8x1xf32>
    %28 = arith.addf %25, %27 : vector<8x1xf32>
    %29 = arith.negf %28 : vector<8x1xf32>
    %30 = math.exp %29 : vector<8x1xf32>
    %cst_19 = arith.constant 1.000000e+00 : f32
    %31 = vector.broadcast %cst_19 : f32 to vector<8x1xf32>
    %32 = arith.addf %31, %30 : vector<8x1xf32>
    %33 = arith.divf %31, %32 : vector<8x1xf32>
    %34 = vector.shape_cast %33 : vector<8x1xf32> to vector<8x1xf32>
    %35 = vector.broadcast %34 : vector<8x1xf32> to vector<8x64xf32>
    %36 = tpu.concatenate %20, %35 in 1 : vector<8x64xf32>, vector<8x64xf32> -> vector<8x128xf32>
    %c0_20 = arith.constant 0 : index
    %c0_21 = arith.constant 0 : index
    %37 = vector.load %arg8[%c0_20, %c0_21] : memref<8x128xf32, #tpu.memory_space<vmem>>, vector<8x128xf32>
    tpu.vector_store %arg8[%c0_20, %c0_21], %36 {strides = array<i32>} : memref<8x128xf32, #tpu.memory_space<vmem>>, vector<8x128xf32>,
    return
  }
  func.func @transform_0(%arg0: i32) -> (i32, i32) {
    %c0_i32 = arith.constant 0 : i32
    %c0_i32_0 = arith.constant 0 : i32
    return %arg0, %c0_i32 : i32, i32
  }
  func.func @transform_1(%arg0: i32) -> (i32, i32) {
    %c0_i32 = arith.constant 0 : i32
    %c0_i32_0 = arith.constant 0 : i32
    %c0_i32_1 = arith.constant 0 : i32
    return %c0_i32, %c0_i32_0 : i32, i32
  }
  func.func @transform_2(%arg0: i32) -> (i32, i32) {
    %c0_i32 = arith.constant 0 : i32
    %c0_i32_0 = arith.constant 0 : i32
    %c0_i32_1 = arith.constant 0 : i32
    return %c0_i32, %c0_i32_0 : i32, i32
  }
  func.func @transform_3(%arg0: i32) -> (i32, i32) {
    %c0_i32 = arith.constant 0 : i32
    %c0_i32_0 = arith.constant 0 : i32
    %c0_i32_1 = arith.constant 0 : i32
    return %c0_i32, %c0_i32_0 : i32, i32
  }
  func.func @transform_4(%arg0: i32) -> (i32, i32) {
    %c0_i32 = arith.constant 0 : i32
    %c0_i32_0 = arith.constant 0 : i32
    %c0_i32_1 = arith.constant 0 : i32
    return %c0_i32, %c0_i32_0 : i32, i32
  }
  func.func @transform_5(%arg0: i32) -> (i32, i32) {
    %c0_i32 = arith.constant 0 : i32
    %c0_i32_0 = arith.constant 0 : i32
    %c0_i32_1 = arith.constant 0 : i32
    return %c0_i32, %c0_i32_0 : i32, i32
  }
  func.func @transform_6(%arg0: i32) -> (i32, i32) {
    %c0_i32 = arith.constant 0 : i32
    %c0_i32_0 = arith.constant 0 : i32
    %c0_i32_1 = arith.constant 0 : i32
    return %c0_i32, %c0_i32_0 : i32, i32
  }
  func.func @transform_7(%arg0: i32) -> (i32, i32) {
    %c0_i32 = arith.constant 0 : i32
    %c0_i32_0 = arith.constant 0 : i32
    return %arg0, %c0_i32 : i32, i32
  }
}

</mosaic_0001>

<bundles_post_ra>
// kernel: tpu_custom_call.1
= control target key start
LH: loop header
LB: loop body
LE: loop exit
PB: predicated region body
PF: predicated region fallthrough
CT: control target
= control target key end

     0   :  { %vm37_vm0 = vcmask 261120   ;;  %s313_s0 = inlined_call_operand.vmem [shape: f32[8,32], index: 0, kind: input, shape index: {}]   ;;  %s314_s1 = inlined_call_operand.vmem [shape: f32[32,128], index: 1, kind: input, shape index: {}]   ;;  %s315_s2 = inlined_call_operand.vmem [shape: f32[1,128], index: 2, kind: input, shape index: {}]   ;;  %s316_s3 = inlined_call_operand.vmem [shape: f32[128,64], index: 3, kind: input, shape index: {}]   ;;  %s317_s4 = inlined_call_operand.vmem [shape: f32[1,64], index: 4, kind: input, shape index: {}]   ;;  %s318_s5 = inlined_call_operand.vmem [shape: f32[1,64], index: 5, kind: input, shape index: {}]   ;;  %s319_s6 = inlined_call_operand.<no memory space> [shape: f32[1,1], index: 6, kind: input, shape index: {}]   ;;  %s320_s7 = inlined_call_operand.hbm [shape: f32[8,128], index: 7, kind: output, shape index: {}]  }
   0x1   :  { %v32_v0 = vld [vmem:[%s314_s1 + $0x18] sm:$0xff]  ;;  %v31_v1 = vld [vmem:[%s314_s1 + $0x10] sm:$0xff]  ;;  %v30_v3 = vld [vmem:[%s314_s1 + $0x8] sm:$0xff] }
   0x2   :  { %53 = vmatpush.msra.mxu0 %v32_v0  ;;  %v79_v2 = vld [vmem:[%s316_s3 + $0x78] sm:$0xff]  ;;  %v78_v4 = vld [vmem:[%s316_s3 + $0x70] sm:$0xff]  ;;  %v77_v5 = vld [vmem:[%s316_s3 + $0x68] sm:$0xff] }
   0x3   :  { %84 = vmatpush.msra.mxu1 %v79_v2  ;;  %v29_v6 = vld [vmem:[%s314_s1] sm:$0xff]  ;;  %v75_v9 = vld [vmem:[%s316_s3 + $0x58] sm:$0xff] }
   0x4   :  { %54 = vmatpush.msra.mxu0 %v31_v1  ;;  %v28_v7 = vld [vmem:[%s313_s0] sm:$0xff] }
   0x5   :  { %85 = vmatpush.msra.mxu1 %v78_v4  ;;  %v76_v8 = vld [vmem:[%s316_s3 + $0x60] sm:$0xff] }
   0x6   :  { %55 = vmatpush.msra.mxu0 %v30_v3 }
   0x7   :  { %86 = vmatpush.msra.mxu1 %v77_v5 }
   0x8   :  { %56 = vmatpush.msra.mxu0 %v29_v6 }
   0x9   :  { %13 = vsyncpa [#allocation4], 0  ;;  %156 = vmatmul.msk.f32.vlgmr.msra.gmra.mxu0 %vm37_vm0, %v28_v7  ;;  %87 = vmatpush.msra.mxu1 %v76_v8  ;;  %v74_v10 = vld [vmem:[%s316_s3 + $0x50] sm:$0xff]  ;;  %v73_v11 = vld [vmem:[%s316_s3 + $0x48] sm:$0xff]  ;;  %vm112_vm3 = vcmask 523264   ;;  %v117_v34 = vstv %s319_s6  ;;  %s147_s23 = sshll.u32 %s320_s7, 4  ;;  %s148_s23 = int_to_ptr.hbm [resolvable:$true] %s147_s23 }
   0xa   :  { %v72_v12 = vld [vmem:[%s316_s3 + $0x40] sm:$0xff]  ;;  %v71_v13 = vld [vmem:[%s316_s3 + $0x38] sm:$0xff]  ;;  %v70_v14 = vld [vmem:[%s316_s3 + $0x30] sm:$0xff] }
   0xb   :  { %88 = vmatpush.msra.mxu1 %v75_v9  ;;  %v69_v15 = vld [vmem:[%s316_s3 + $0x28] sm:$0xff]  ;;  %v68_v16 = vld [vmem:[%s316_s3 + $0x20] sm:$0xff]  ;;  %v67_v17 = vld [vmem:[%s316_s3 + $0x18] sm:$0xff] }
   0xc   :  { %v66_v18 = vld [vmem:[%s316_s3 + $0x10] sm:$0xff]  ;;  %v65_v19 = vld [vmem:[%s316_s3 + $0x8] sm:$0xff]  ;;  %v64_v20 = vld [vmem:[%s316_s3] sm:$0xff] }
   0xd   :  { %89 = vmatpush.msra.mxu1 %v74_v10  ;;  %v159_v21 = vld [vmem:[%s315_s2] ss:$0 sm:$0xff] }
   0xe   :  { %v160_v26 = vld [vmem:[%s317_s4] ss:$0 sm:$0xff]  ;;  %s192_s4 = smov [#allocation3]  }
   0xf   :  { %90 = vmatpush.msra.mxu1 %v73_v11  ;;  %v161_v29 = vld [vmem:[%s318_s5] ss:$0 sm:$0xff]  ;;  %s145_s5 = sshll.u32 %s192_s4, 4  ;;  %s146_s5 = int_to_ptr.vmem [resolvable:$true] %s145_s5 }
  0x11   :  { %91 = vmatpush.msra.mxu1 %v72_v12 }
  0x13   :  { %92 = vmatpush.msra.mxu1 %v71_v13 }
  0x15   :  { %93 = vmatpush.msra.mxu1 %v70_v14 }
  0x17   :  { %94 = vmatpush.msra.mxu1 %v69_v15 }
  0x19   :  { %95 = vmatpush.msra.mxu1 %v68_v16 }
  0x1b   :  { %96 = vmatpush.msra.mxu1 %v67_v17 }
  0x1d   :  { %97 = vmatpush.msra.mxu1 %v66_v18 }
  0x1f   :  { %98 = vmatpush.msra.mxu1 %v65_v19 }
  0x21   :  { %99 = vmatpush.msra.mxu1 %v64_v20 }
  0x86   :  { %v58_v22 = vpop.f32.mrf.mxu0 }
  0x87   :  { %v59_v23 = vadd.f32 %v159_v21, %v58_v22 }
  0x89   :  { %vm61_vm1 = vcmp.gt.f32.partialorder %v59_v23, 0.0  ;;  %v62_v24 = vmul.f32 0.2, %v59_v23 }
  0x8b   :  { %v63_v25 = vsel %vm61_vm1, %v59_v23, %v62_v24 }
  0x8c   :  { %100 = vmatmul.f32.vlgmr.msra.gmra.mxu1 %v63_v25 }
 0x109   :  { %v101_v27 = vpop.f32.mrf.mxu1 }
 0x10a   :  { %v102_v28 = vadd.f32 %v160_v26, %v101_v27 }
 0x10c   :  { %v105_v30 = vmul.f32 0.2, %v102_v28  ;;  %vm104_vm2 = vcmp.gt.f32.partialorder %v102_v28, 0.0 }
 0x10e   :  { %v106_v31 = vsel %vm104_vm2, %v102_v28, %v105_v30 }
 0x10f   :  { %v111_v32 = vmul.f32 %v161_v29, %v106_v31 }
 0x111   :  { %v113_v33 = vsel %vm112_vm3, %v111_v32, 0.0 }
 0x112   :  { %114 = vadd.xlane.f32.xlu0 %v113_v33 }
 0x185   :  { %v115_v35 = vpop.xlane.xlu0 %114 }
 0x186   :  { %v118_v36 = vadd.f32 %v117_v34, %v115_v35 }
 0x188   :  { %v157_v37 = vmul.f32 -1.442695, %v118_v36 }
 0x18a   :  { %162 = vpow2.f32 %v157_v37 }
 0x190   :  { %v163_v38 = vpop.eup %162 }
 0x191   :  { %v122_v39 = vadd.f32 1.0, %v163_v38 }
 0x193   :  { %164 = vrcp.f32 %v122_v39  ;;  %v134_v43 = vand.u32 2147483648, %v122_v39  ;;  %v132_v45 = vand.u32 2147483647, %v122_v39  ;;  %vm128_vm5 = vweird.f32 %v122_v39 }
 0x195   :  { %v135_v47 = vor.u32 1.1754944e-38, %v134_v43  ;;  %vm133_vm7 = vcmp.eq.f32.partialorder %v132_v45, 8.507059e+37 }
 0x199   :  { %v165_v40 = vpop.eup %164 }
 0x19a   :  { %v124_v41 = vmul.f32 %v165_v40, %v122_v39  ;;  %vm129_vm4 = vweird.f32 %v165_v40 }
 0x19b   :  { %vm130_vm6 = vmor %vm128_vm5, %vm129_vm4 }
 0x19c   :  { %v125_v42 = vsub.f32 1.0, %v124_v41 }
 0x19e   :  { %v126_v44 = vmul.f32 %v165_v40, %v125_v42 }
 0x1a0   :  { %v127_v46 = vadd.f32 %v165_v40, %v126_v44 }
 0x1a2   :  { %v131_v48 = vsel %vm130_vm6, %v165_v40, %v127_v46 }
 0x1a3   :  { %v136_v49 = vsel %vm133_vm7, %v135_v47, %v131_v48 }
 0x1a4   :  { %v138_v50 = vsel %vm112_vm3, %v106_v31, %v136_v49 }
 0x1a5   :  { %139 = vst [vmem:[#allocation3] sm:$0xff] %v138_v50 }
 0x1a6   :  { %150 = dma.vmem_to_hbm [thread:$0]  %s146_s5, 128, %s148_s23, [#allocation4]  }
 0x1a7   :  { %190 = dma.done.wait [#allocation4], 128  }
 0x1a8   :  { %191 = vsyncadd [#allocation4], 4294967168 }
 0x1a9   :  { %155 = vsyncpa [#allocation4], 1 }

</bundles_post_ra>
